<compile_context>
chip_gen: v7x
topology: tpu7x:2x2x1
jax: 0.10.0
libtpu: 0.0.40
codegen_flags: <defaults>
</compile_context>

<pallas_src>
import functools

import jax
import jax.numpy as jnp
from jax.experimental import pallas as pl
from jax.experimental.pallas import tpu as pltpu


def _crp_kernel(w_ref, x_ref, o_ref, *, n_stages, W):
    """Single-invocation kernel over the whole (N*C, H*W) problem.

    w_ref: VMEM (n_stages, N*C, N*C) f32 -- block-diagonal 1x1-conv weights
           (each diagonal block is that stage's (C, C) weight for one batch).
    x_ref: VMEM (N*C, H*W) f32 -- rows are batch-major, channel-minor.
    o_ref: VMEM (N*C, H*W) f32.
    """
    NC, HW = x_ref.shape
    neg_inf = jnp.float32(-jnp.inf)

    # ---- hoisted once per call (not per stage) ----
    flat = jax.lax.broadcasted_iota(jnp.int32, (NC, HW), 1)
    col = flat % W
    # Horizontal (column) wrap masks for dx = -1, -2, +1, +2.
    m_l1 = col >= 1
    m_l2 = col >= 2
    m_r1 = col <= W - 2
    m_r2 = col <= W - 3
    # Vertical (row) wrap masks for dy = -1, -2, +1, +2 (flat +-W, +-2W).
    m_u1 = flat >= W
    m_u2 = flat >= 2 * W
    m_d1 = flat < HW - W
    m_d2 = flat < HW - 2 * W

    def shifted(t, delta, mask):
        # Brings t[f + delta] to position f via a register-resident XLU lane
        # rotate (jnp.roll semantics => rotate by -delta); out-of-row lanes
        # are replaced by -inf so the max ignores them.
        return jnp.where(mask, pltpu.roll(t, (-delta) % HW, axis=1), neg_inf)

    x = x_ref[...]
    top = x
    acc = x
    for i in range(n_stages):
        # ---- MaxPool2d(kernel=5, stride=1, padding=2), separable tree-max --
        # Horizontal pass: max over dx in [-2, 2].
        h = jnp.maximum(
            jnp.maximum(
                jnp.maximum(shifted(top, -1, m_l1), shifted(top, 1, m_r1)),
                jnp.maximum(shifted(top, -2, m_l2), shifted(top, 2, m_r2))),
            top)
        # Vertical pass: max over dy in [-2, 2] (flat offsets +-W, +-2W).
        pooled = jnp.maximum(
            jnp.maximum(
                jnp.maximum(shifted(h, -W, m_u1), shifted(h, W, m_d1)),
                jnp.maximum(shifted(h, -2 * W, m_u2), shifted(h, 2 * W, m_d2))),
            h)

        # ---- 1x1 conv (groups=1, bias=False): one tiny MXU matmul ----
        conv = jnp.dot(w_ref[i], pooled, preferred_element_type=jnp.float32)

        top = conv
        acc = acc + conv

    o_ref[...] = acc.astype(o_ref.dtype)


def crp_block(x, weights):
    """x: (N, C, H, W) f32; weights: (n_stages, C_out, C_in), C_out == C_in == C."""
    N, C, H, W = x.shape
    n_stages = weights.shape[0]
    NC, HW = N * C, H * W

    # Lane-dense, full-vreg presentation: one (N*C, H*W) block.
    x_flat = x.reshape(NC, HW)

    # Block-diagonal per-stage weights: a single (NC, NC) @ (NC, HW) matmul
    # then applies the per-batch 1x1 conv to the batch-merged rows.
    eye_n = jnp.eye(N, dtype=weights.dtype)
    w_block = jnp.einsum("nm,soc->snomc", eye_n, weights).reshape(
        n_stages, NC, NC)

    kernel = functools.partial(_crp_kernel, n_stages=n_stages, W=W)

    out_flat = pl.pallas_call(
        kernel,
        out_shape=jax.ShapeDtypeStruct((NC, HW), x.dtype),
        in_specs=[
            pl.BlockSpec(memory_space=pltpu.MemorySpace.VMEM),  # weights
            pl.BlockSpec(memory_space=pltpu.MemorySpace.VMEM),  # x
        ],
        out_specs=pl.BlockSpec(memory_space=pltpu.MemorySpace.VMEM),
    )(w_block, x_flat)

    return out_flat.reshape(N, C, H, W)


def crp_block_ref(x, weights):
    """Pure-JAX reference mirroring the PyTorch forward."""
    def maxpool5(t):
        return jax.lax.reduce_window(
            t, -jnp.inf, jax.lax.max,
            window_dimensions=(1, 1, 5, 5),
            window_strides=(1, 1, 1, 1),
            padding=((0, 0), (0, 0), (2, 2), (2, 2)),
        )

    acc = x
    top = x
    for i in range(weights.shape[0]):
        top = maxpool5(top)
        top = jnp.einsum("oc,nchw->nohw", weights[i], top)
        acc = acc + top
    return acc


if __name__ == "__main__":
    # CRPBlock(in_planes=4, out_planes=4, n_stages=4), input (2, 4, 16, 16)
    N, C, H, W = 2, 4, 16, 16
    n_stages = 4

    key = jax.random.PRNGKey(0)
    kx, kw = jax.random.split(key)
    x = jax.random.normal(kx, (N, C, H, W), dtype=jnp.float32)
    # conv1x1 weights: (n_stages, out_planes, in_planes), bias=False
    weights = 0.1 * jax.random.normal(kw, (n_stages, C, C), dtype=jnp.float32)

    out = crp_block(x, weights)
    out = jax.block_until_ready(out)

    ref = crp_block_ref(x, weights)
    assert out.shape == (N, C, H, W)
    assert jnp.allclose(out, ref, atol=1e-4, rtol=1e-4), "mismatch vs reference"

    print("KERNEL_OK")
</pallas_src>

<mosaic_0001>
module attributes {stable_mosaic.version = 11 : i64} {
  func.func @_crp_kernel(%arg0: memref<4x8x8xf32, #tpu.memory_space<vmem>>, %arg1: memref<8x256xf32, #tpu.memory_space<vmem>>, %arg2: memref<8x256xf32, #tpu.memory_space<vmem>>) attributes {dimension_semantics = [], scalar_prefetch = 0 : i64, scratch_operands = 0 : i64, tpu.core_type = #tpu.core_type<tc>} {
    %0 = tpu.iota {dimensions = array<i32: 1>} : vector<8x256xi32>
    %c16_i32 = arith.constant 16 : i32
    %c0_i32 = arith.constant 0 : i32
    %1 = arith.cmpi eq, %c16_i32, %c0_i32 : i32
    %c1_i32 = arith.constant 1 : i32
    %2 = arith.select %1, %c1_i32, %c16_i32 : i32
    %3 = vector.broadcast %2 : i32 to vector<8x256xi32>
    %4 = arith.remsi %0, %3 : vector<8x256xi32>
    %c0_i32_0 = arith.constant 0 : i32
    %5 = vector.broadcast %c0_i32_0 : i32 to vector<8x256xi32>
    %6 = arith.cmpi ne, %4, %5 : vector<8x256xi32>
    %c0_i32_1 = arith.constant 0 : i32
    %7 = vector.broadcast %c0_i32_1 : i32 to vector<8x256xi32>
    %8 = arith.cmpi slt, %4, %7 : vector<8x256xi32>
    %c0_i32_2 = arith.constant 0 : i32
    %9 = arith.cmpi slt, %2, %c0_i32_2 : i32
    %10 = vector.broadcast %9 : i1 to vector<8x256xi1>
    %11 = vector.broadcast %10 : vector<8x256xi1> to vector<8x256xi1>
    %12 = arith.xori %8, %11 : vector<8x256xi1>
    %13 = arith.andi %12, %6 : vector<8x256xi1>
    %14 = vector.broadcast %2 : i32 to vector<8x256xi32>
    %15 = arith.addi %4, %14 : vector<8x256xi32>
    %16 = arith.select %13, %15, %4 : vector<8x256xi1>, vector<8x256xi32>
    %c1_i32_3 = arith.constant 1 : i32
    %17 = vector.broadcast %c1_i32_3 : i32 to vector<8x256xi32>
    %18 = arith.cmpi sge, %16, %17 : vector<8x256xi32>
    %c2_i32 = arith.constant 2 : i32
    %19 = vector.broadcast %c2_i32 : i32 to vector<8x256xi32>
    %20 = arith.cmpi sge, %16, %19 : vector<8x256xi32>
    %c14_i32 = arith.constant 14 : i32
    %21 = vector.broadcast %c14_i32 : i32 to vector<8x256xi32>
    %22 = arith.cmpi sle, %16, %21 : vector<8x256xi32>
    %c13_i32 = arith.constant 13 : i32
    %23 = vector.broadcast %c13_i32 : i32 to vector<8x256xi32>
    %24 = arith.cmpi sle, %16, %23 : vector<8x256xi32>
    %c16_i32_4 = arith.constant 16 : i32
    %25 = vector.broadcast %c16_i32_4 : i32 to vector<8x256xi32>
    %26 = arith.cmpi sge, %0, %25 : vector<8x256xi32>
    %c32_i32 = arith.constant 32 : i32
    %27 = vector.broadcast %c32_i32 : i32 to vector<8x256xi32>
    %28 = arith.cmpi sge, %0, %27 : vector<8x256xi32>
    %c240_i32 = arith.constant 240 : i32
    %29 = vector.broadcast %c240_i32 : i32 to vector<8x256xi32>
    %30 = arith.cmpi slt, %0, %29 : vector<8x256xi32>
    %c224_i32 = arith.constant 224 : i32
    %31 = vector.broadcast %c224_i32 : i32 to vector<8x256xi32>
    %32 = arith.cmpi slt, %0, %31 : vector<8x256xi32>
    %c0 = arith.constant 0 : index
    %c0_5 = arith.constant 0 : index
    %33 = vector.load %arg1[%c0, %c0_5] : memref<8x256xf32, #tpu.memory_space<vmem>>, vector<8x256xf32>
    %c1_i32_6 = arith.constant 1 : i32
    %34 = tpu.dynamic_rotate %33 by %c1_i32_6 dim 1 : vector<8x256xf32>, i32 -> vector<8x256xf32>
    %cst = arith.constant 0xFF800000 : f32
    %35 = vector.broadcast %cst : f32 to vector<8x256xf32>
    %36 = arith.select %18, %34, %35 : vector<8x256xi1>, vector<8x256xf32>
    %c255_i32 = arith.constant 255 : i32
    %37 = tpu.dynamic_rotate %33 by %c255_i32 dim 1 : vector<8x256xf32>, i32 -> vector<8x256xf32>
    %cst_7 = arith.constant 0xFF800000 : f32
    %38 = vector.broadcast %cst_7 : f32 to vector<8x256xf32>
    %39 = arith.select %22, %37, %38 : vector<8x256xi1>, vector<8x256xf32>
    %40 = arith.maximumf %36, %39 : vector<8x256xf32>
    %c2_i32_8 = arith.constant 2 : i32
    %41 = tpu.dynamic_rotate %33 by %c2_i32_8 dim 1 : vector<8x256xf32>, i32 -> vector<8x256xf32>
    %cst_9 = arith.constant 0xFF800000 : f32
    %42 = vector.broadcast %cst_9 : f32 to vector<8x256xf32>
    %43 = arith.select %20, %41, %42 : vector<8x256xi1>, vector<8x256xf32>
    %c254_i32 = arith.constant 254 : i32
    %44 = tpu.dynamic_rotate %33 by %c254_i32 dim 1 : vector<8x256xf32>, i32 -> vector<8x256xf32>
    %cst_10 = arith.constant 0xFF800000 : f32
    %45 = vector.broadcast %cst_10 : f32 to vector<8x256xf32>
    %46 = arith.select %24, %44, %45 : vector<8x256xi1>, vector<8x256xf32>
    %47 = arith.maximumf %43, %46 : vector<8x256xf32>
    %48 = arith.maximumf %40, %47 : vector<8x256xf32>
    %49 = arith.maximumf %48, %33 : vector<8x256xf32>
    %c16_i32_11 = arith.constant 16 : i32
    %50 = tpu.dynamic_rotate %49 by %c16_i32_11 dim 1 : vector<8x256xf32>, i32 -> vector<8x256xf32>
    %cst_12 = arith.constant 0xFF800000 : f32
    %51 = vector.broadcast %cst_12 : f32 to vector<8x256xf32>
    %52 = arith.select %26, %50, %51 : vector<8x256xi1>, vector<8x256xf32>
    %c240_i32_13 = arith.constant 240 : i32
    %53 = tpu.dynamic_rotate %49 by %c240_i32_13 dim 1 : vector<8x256xf32>, i32 -> vector<8x256xf32>
    %cst_14 = arith.constant 0xFF800000 : f32
    %54 = vector.broadcast %cst_14 : f32 to vector<8x256xf32>
    %55 = arith.select %30, %53, %54 : vector<8x256xi1>, vector<8x256xf32>
    %56 = arith.maximumf %52, %55 : vector<8x256xf32>
    %c32_i32_15 = arith.constant 32 : i32
    %57 = tpu.dynamic_rotate %49 by %c32_i32_15 dim 1 : vector<8x256xf32>, i32 -> vector<8x256xf32>
    %cst_16 = arith.constant 0xFF800000 : f32
    %58 = vector.broadcast %cst_16 : f32 to vector<8x256xf32>
    %59 = arith.select %28, %57, %58 : vector<8x256xi1>, vector<8x256xf32>
    %c224_i32_17 = arith.constant 224 : i32
    %60 = tpu.dynamic_rotate %49 by %c224_i32_17 dim 1 : vector<8x256xf32>, i32 -> vector<8x256xf32>
    %cst_18 = arith.constant 0xFF800000 : f32
    %61 = vector.broadcast %cst_18 : f32 to vector<8x256xf32>
    %62 = arith.select %32, %60, %61 : vector<8x256xi1>, vector<8x256xf32>
    %63 = arith.maximumf %59, %62 : vector<8x256xf32>
    %64 = arith.maximumf %56, %63 : vector<8x256xf32>
    %65 = arith.maximumf %64, %49 : vector<8x256xf32>
    %c0_19 = arith.constant 0 : index
    %c0_20 = arith.constant 0 : index
    %c0_21 = arith.constant 0 : index
    %66 = vector.load %arg0[%c0_19, %c0_20, %c0_21] : memref<4x8x8xf32, #tpu.memory_space<vmem>>, vector<1x8x8xf32>
    %67 = vector.shape_cast %66 : vector<1x8x8xf32> to vector<8x8xf32>
    %cst_22 = arith.constant dense<0.000000e+00> : vector<8x256xf32>
    %68 = tpu.matmul %67, %65, %cst_22 {dimension_numbers = #tpu.dot_dimension_numbers<[1], [0], [0], [1], [0, 0, 1, 1], [], []>} : vector<8x8xf32>, vector<8x256xf32>, vector<8x256xf32> -> vector<8x256xf32>
    %69 = arith.addf %33, %68 : vector<8x256xf32>
    %c1_i32_23 = arith.constant 1 : i32
    %70 = tpu.dynamic_rotate %68 by %c1_i32_23 dim 1 : vector<8x256xf32>, i32 -> vector<8x256xf32>
    %cst_24 = arith.constant 0xFF800000 : f32
    %71 = vector.broadcast %cst_24 : f32 to vector<8x256xf32>
    %72 = arith.select %18, %70, %71 : vector<8x256xi1>, vector<8x256xf32>
    %c255_i32_25 = arith.constant 255 : i32
    %73 = tpu.dynamic_rotate %68 by %c255_i32_25 dim 1 : vector<8x256xf32>, i32 -> vector<8x256xf32>
    %cst_26 = arith.constant 0xFF800000 : f32
    %74 = vector.broadcast %cst_26 : f32 to vector<8x256xf32>
    %75 = arith.select %22, %73, %74 : vector<8x256xi1>, vector<8x256xf32>
    %76 = arith.maximumf %72, %75 : vector<8x256xf32>
    %c2_i32_27 = arith.constant 2 : i32
    %77 = tpu.dynamic_rotate %68 by %c2_i32_27 dim 1 : vector<8x256xf32>, i32 -> vector<8x256xf32>
    %cst_28 = arith.constant 0xFF800000 : f32
    %78 = vector.broadcast %cst_28 : f32 to vector<8x256xf32>
    %79 = arith.select %20, %77, %78 : vector<8x256xi1>, vector<8x256xf32>
    %c254_i32_29 = arith.constant 254 : i32
    %80 = tpu.dynamic_rotate %68 by %c254_i32_29 dim 1 : vector<8x256xf32>, i32 -> vector<8x256xf32>
    %cst_30 = arith.constant 0xFF800000 : f32
    %81 = vector.broadcast %cst_30 : f32 to vector<8x256xf32>
    %82 = arith.select %24, %80, %81 : vector<8x256xi1>, vector<8x256xf32>
    %83 = arith.maximumf %79, %82 : vector<8x256xf32>
    %84 = arith.maximumf %76, %83 : vector<8x256xf32>
    %85 = arith.maximumf %84, %68 : vector<8x256xf32>
    %c16_i32_31 = arith.constant 16 : i32
    %86 = tpu.dynamic_rotate %85 by %c16_i32_31 dim 1 : vector<8x256xf32>, i32 -> vector<8x256xf32>
    %cst_32 = arith.constant 0xFF800000 : f32
    %87 = vector.broadcast %cst_32 : f32 to vector<8x256xf32>
    %88 = arith.select %26, %86, %87 : vector<8x256xi1>, vector<8x256xf32>
    %c240_i32_33 = arith.constant 240 : i32
    %89 = tpu.dynamic_rotate %85 by %c240_i32_33 dim 1 : vector<8x256xf32>, i32 -> vector<8x256xf32>
    %cst_34 = arith.constant 0xFF800000 : f32
    %90 = vector.broadcast %cst_34 : f32 to vector<8x256xf32>
    %91 = arith.select %30, %89, %90 : vector<8x256xi1>, vector<8x256xf32>
    %92 = arith.maximumf %88, %91 : vector<8x256xf32>
    %c32_i32_35 = arith.constant 32 : i32
    %93 = tpu.dynamic_rotate %85 by %c32_i32_35 dim 1 : vector<8x256xf32>, i32 -> vector<8x256xf32>
    %cst_36 = arith.constant 0xFF800000 : f32
    %94 = vector.broadcast %cst_36 : f32 to vector<8x256xf32>
    %95 = arith.select %28, %93, %94 : vector<8x256xi1>, vector<8x256xf32>
    %c224_i32_37 = arith.constant 224 : i32
    %96 = tpu.dynamic_rotate %85 by %c224_i32_37 dim 1 : vector<8x256xf32>, i32 -> vector<8x256xf32>
    %cst_38 = arith.constant 0xFF800000 : f32
    %97 = vector.broadcast %cst_38 : f32 to vector<8x256xf32>
    %98 = arith.select %32, %96, %97 : vector<8x256xi1>, vector<8x256xf32>
    %99 = arith.maximumf %95, %98 : vector<8x256xf32>
    %100 = arith.maximumf %92, %99 : vector<8x256xf32>
    %101 = arith.maximumf %100, %85 : vector<8x256xf32>
    %c1 = arith.constant 1 : index
    %c0_39 = arith.constant 0 : index
    %c0_40 = arith.constant 0 : index
    %102 = vector.load %arg0[%c1, %c0_39, %c0_40] : memref<4x8x8xf32, #tpu.memory_space<vmem>>, vector<1x8x8xf32>
    %103 = vector.shape_cast %102 : vector<1x8x8xf32> to vector<8x8xf32>
    %cst_41 = arith.constant dense<0.000000e+00> : vector<8x256xf32>
    %104 = tpu.matmul %103, %101, %cst_41 {dimension_numbers = #tpu.dot_dimension_numbers<[1], [0], [0], [1], [0, 0, 1, 1], [], []>} : vector<8x8xf32>, vector<8x256xf32>, vector<8x256xf32> -> vector<8x256xf32>
    %105 = arith.addf %69, %104 : vector<8x256xf32>
    %c1_i32_42 = arith.constant 1 : i32
    %106 = tpu.dynamic_rotate %104 by %c1_i32_42 dim 1 : vector<8x256xf32>, i32 -> vector<8x256xf32>
    %cst_43 = arith.constant 0xFF800000 : f32
    %107 = vector.broadcast %cst_43 : f32 to vector<8x256xf32>
    %108 = arith.select %18, %106, %107 : vector<8x256xi1>, vector<8x256xf32>
    %c255_i32_44 = arith.constant 255 : i32
    %109 = tpu.dynamic_rotate %104 by %c255_i32_44 dim 1 : vector<8x256xf32>, i32 -> vector<8x256xf32>
    %cst_45 = arith.constant 0xFF800000 : f32
    %110 = vector.broadcast %cst_45 : f32 to vector<8x256xf32>
    %111 = arith.select %22, %109, %110 : vector<8x256xi1>, vector<8x256xf32>
    %112 = arith.maximumf %108, %111 : vector<8x256xf32>
    %c2_i32_46 = arith.constant 2 : i32
    %113 = tpu.dynamic_rotate %104 by %c2_i32_46 dim 1 : vector<8x256xf32>, i32 -> vector<8x256xf32>
    %cst_47 = arith.constant 0xFF800000 : f32
    %114 = vector.broadcast %cst_47 : f32 to vector<8x256xf32>
    %115 = arith.select %20, %113, %114 : vector<8x256xi1>, vector<8x256xf32>
    %c254_i32_48 = arith.constant 254 : i32
    %116 = tpu.dynamic_rotate %104 by %c254_i32_48 dim 1 : vector<8x256xf32>, i32 -> vector<8x256xf32>
    %cst_49 = arith.constant 0xFF800000 : f32
    %117 = vector.broadcast %cst_49 : f32 to vector<8x256xf32>
    %118 = arith.select %24, %116, %117 : vector<8x256xi1>, vector<8x256xf32>
    %119 = arith.maximumf %115, %118 : vector<8x256xf32>
    %120 = arith.maximumf %112, %119 : vector<8x256xf32>
    %121 = arith.maximumf %120, %104 : vector<8x256xf32>
    %c16_i32_50 = arith.constant 16 : i32
    %122 = tpu.dynamic_rotate %121 by %c16_i32_50 dim 1 : vector<8x256xf32>, i32 -> vector<8x256xf32>
    %cst_51 = arith.constant 0xFF800000 : f32
    %123 = vector.broadcast %cst_51 : f32 to vector<8x256xf32>
    %124 = arith.select %26, %122, %123 : vector<8x256xi1>, vector<8x256xf32>
    %c240_i32_52 = arith.constant 240 : i32
    %125 = tpu.dynamic_rotate %121 by %c240_i32_52 dim 1 : vector<8x256xf32>, i32 -> vector<8x256xf32>
    %cst_53 = arith.constant 0xFF800000 : f32
    %126 = vector.broadcast %cst_53 : f32 to vector<8x256xf32>
    %127 = arith.select %30, %125, %126 : vector<8x256xi1>, vector<8x256xf32>
    %128 = arith.maximumf %124, %127 : vector<8x256xf32>
    %c32_i32_54 = arith.constant 32 : i32
    %129 = tpu.dynamic_rotate %121 by %c32_i32_54 dim 1 : vector<8x256xf32>, i32 -> vector<8x256xf32>
    %cst_55 = arith.constant 0xFF800000 : f32
    %130 = vector.broadcast %cst_55 : f32 to vector<8x256xf32>
    %131 = arith.select %28, %129, %130 : vector<8x256xi1>, vector<8x256xf32>
    %c224_i32_56 = arith.constant 224 : i32
    %132 = tpu.dynamic_rotate %121 by %c224_i32_56 dim 1 : vector<8x256xf32>, i32 -> vector<8x256xf32>
    %cst_57 = arith.constant 0xFF800000 : f32
    %133 = vector.broadcast %cst_57 : f32 to vector<8x256xf32>
    %134 = arith.select %32, %132, %133 : vector<8x256xi1>, vector<8x256xf32>
    %135 = arith.maximumf %131, %134 : vector<8x256xf32>
    %136 = arith.maximumf %128, %135 : vector<8x256xf32>
    %137 = arith.maximumf %136, %121 : vector<8x256xf32>
    %c2 = arith.constant 2 : index
    %c0_58 = arith.constant 0 : index
    %c0_59 = arith.constant 0 : index
    %138 = vector.load %arg0[%c2, %c0_58, %c0_59] : memref<4x8x8xf32, #tpu.memory_space<vmem>>, vector<1x8x8xf32>
    %139 = vector.shape_cast %138 : vector<1x8x8xf32> to vector<8x8xf32>
    %cst_60 = arith.constant dense<0.000000e+00> : vector<8x256xf32>
    %140 = tpu.matmul %139, %137, %cst_60 {dimension_numbers = #tpu.dot_dimension_numbers<[1], [0], [0], [1], [0, 0, 1, 1], [], []>} : vector<8x8xf32>, vector<8x256xf32>, vector<8x256xf32> -> vector<8x256xf32>
    %141 = arith.addf %105, %140 : vector<8x256xf32>
    %c1_i32_61 = arith.constant 1 : i32
    %142 = tpu.dynamic_rotate %140 by %c1_i32_61 dim 1 : vector<8x256xf32>, i32 -> vector<8x256xf32>
    %cst_62 = arith.constant 0xFF800000 : f32
    %143 = vector.broadcast %cst_62 : f32 to vector<8x256xf32>
    %144 = arith.select %18, %142, %143 : vector<8x256xi1>, vector<8x256xf32>
    %c255_i32_63 = arith.constant 255 : i32
    %145 = tpu.dynamic_rotate %140 by %c255_i32_63 dim 1 : vector<8x256xf32>, i32 -> vector<8x256xf32>
    %cst_64 = arith.constant 0xFF800000 : f32
    %146 = vector.broadcast %cst_64 : f32 to vector<8x256xf32>
    %147 = arith.select %22, %145, %146 : vector<8x256xi1>, vector<8x256xf32>
    %148 = arith.maximumf %144, %147 : vector<8x256xf32>
    %c2_i32_65 = arith.constant 2 : i32
    %149 = tpu.dynamic_rotate %140 by %c2_i32_65 dim 1 : vector<8x256xf32>, i32 -> vector<8x256xf32>
    %cst_66 = arith.constant 0xFF800000 : f32
    %150 = vector.broadcast %cst_66 : f32 to vector<8x256xf32>
    %151 = arith.select %20, %149, %150 : vector<8x256xi1>, vector<8x256xf32>
    %c254_i32_67 = arith.constant 254 : i32
    %152 = tpu.dynamic_rotate %140 by %c254_i32_67 dim 1 : vector<8x256xf32>, i32 -> vector<8x256xf32>
    %cst_68 = arith.constant 0xFF800000 : f32
    %153 = vector.broadcast %cst_68 : f32 to vector<8x256xf32>
    %154 = arith.select %24, %152, %153 : vector<8x256xi1>, vector<8x256xf32>
    %155 = arith.maximumf %151, %154 : vector<8x256xf32>
    %156 = arith.maximumf %148, %155 : vector<8x256xf32>
    %157 = arith.maximumf %156, %140 : vector<8x256xf32>
    %c16_i32_69 = arith.constant 16 : i32
    %158 = tpu.dynamic_rotate %157 by %c16_i32_69 dim 1 : vector<8x256xf32>, i32 -> vector<8x256xf32>
    %cst_70 = arith.constant 0xFF800000 : f32
    %159 = vector.broadcast %cst_70 : f32 to vector<8x256xf32>
    %160 = arith.select %26, %158, %159 : vector<8x256xi1>, vector<8x256xf32>
    %c240_i32_71 = arith.constant 240 : i32
    %161 = tpu.dynamic_rotate %157 by %c240_i32_71 dim 1 : vector<8x256xf32>, i32 -> vector<8x256xf32>
    %cst_72 = arith.constant 0xFF800000 : f32
    %162 = vector.broadcast %cst_72 : f32 to vector<8x256xf32>
    %163 = arith.select %30, %161, %162 : vector<8x256xi1>, vector<8x256xf32>
    %164 = arith.maximumf %160, %163 : vector<8x256xf32>
    %c32_i32_73 = arith.constant 32 : i32
    %165 = tpu.dynamic_rotate %157 by %c32_i32_73 dim 1 : vector<8x256xf32>, i32 -> vector<8x256xf32>
    %cst_74 = arith.constant 0xFF800000 : f32
    %166 = vector.broadcast %cst_74 : f32 to vector<8x256xf32>
    %167 = arith.select %28, %165, %166 : vector<8x256xi1>, vector<8x256xf32>
    %c224_i32_75 = arith.constant 224 : i32
    %168 = tpu.dynamic_rotate %157 by %c224_i32_75 dim 1 : vector<8x256xf32>, i32 -> vector<8x256xf32>
    %cst_76 = arith.constant 0xFF800000 : f32
    %169 = vector.broadcast %cst_76 : f32 to vector<8x256xf32>
    %170 = arith.select %32, %168, %169 : vector<8x256xi1>, vector<8x256xf32>
    %171 = arith.maximumf %167, %170 : vector<8x256xf32>
    %172 = arith.maximumf %164, %171 : vector<8x256xf32>
    %173 = arith.maximumf %172, %157 : vector<8x256xf32>
    %c3 = arith.constant 3 : index
    %c0_77 = arith.constant 0 : index
    %c0_78 = arith.constant 0 : index
    %174 = vector.load %arg0[%c3, %c0_77, %c0_78] : memref<4x8x8xf32, #tpu.memory_space<vmem>>, vector<1x8x8xf32>
    %175 = vector.shape_cast %174 : vector<1x8x8xf32> to vector<8x8xf32>
    %cst_79 = arith.constant dense<0.000000e+00> : vector<8x256xf32>
    %176 = tpu.matmul %175, %173, %cst_79 {dimension_numbers = #tpu.dot_dimension_numbers<[1], [0], [0], [1], [0, 0, 1, 1], [], []>} : vector<8x8xf32>, vector<8x256xf32>, vector<8x256xf32> -> vector<8x256xf32>
    %177 = arith.addf %141, %176 : vector<8x256xf32>
    %c0_80 = arith.constant 0 : index
    %c0_81 = arith.constant 0 : index
    %178 = vector.load %arg2[%c0_80, %c0_81] : memref<8x256xf32, #tpu.memory_space<vmem>>, vector<8x256xf32>
    tpu.vector_store %arg2[%c0_80, %c0_81], %177 {strides = array<i32>} : memref<8x256xf32, #tpu.memory_space<vmem>>, vector<8x256xf32>,
    return
  }
}

</mosaic_0001>

<bundles_post_ra>
// kernel: tpu_custom_call.1
= control target key start
LH: loop header
LB: loop body
LE: loop exit
PB: predicated region body
PF: predicated region fallthrough
CT: control target
= control target key end

     0   :  { %7 = vsyncpa [#allocation3], 0  ;;  %s1267_s0 = inlined_call_operand.hbm [shape: f32[4,8,8], index: 0, kind: input, shape index: {}]   ;;  %s1268_s1 = inlined_call_operand.hbm [shape: f32[8,256], index: 1, kind: input, shape index: {}]   ;;  %s1269_s2 = inlined_call_operand.hbm [shape: f32[8,256], index: 2, kind: output, shape index: {}]  }
   0x1   :  { %8 = vsyncpa [#allocation6], 0 }
   0x2   :  { %9 = vsyncpa [#allocation4], 0  ;;  %s831_s9 = smov [#allocation2]   ;;  %s759_s13 = scalar_lea.hbm %s1267_s0, 512 }
   0x3   :  { %s15_s10 = sshll.u32 %s831_s9, 4  ;;  %p760_p0 = scmp.ne.s32.totalorder %s1267_s0, %s759_s13  ;;  %s16_s10 = int_to_ptr.vmem [resolvable:$true] %s15_s10 }
   0x4   :  { %p763_p1 = scmp.lt.u32.totalorder %s759_s13, %s1267_s0 }
   0x6   :  { %p765_p2 = pnand %p763_p1, %p760_p0 }
   0x8   :  { %768 = shalt.err (!%p765_p2)
}
   0x9   :  { %s769_s18 = scalar_lea.vmem %s16_s10, 512  ;;  %p774_p4 = scmp.lt.s32.totalorder %s16_s10, %s16_s10 }
   0xa   :  { %p770_p3 = scmp.ne.s32.totalorder %s16_s10, %s769_s18  ;;  %p775_p5 = scmp.lt.s32.totalorder %s769_s18, %s769_s18 }
   0xc   :  { %p776_p6 = por %p775_p5, %p774_p4 }
   0xe   :  { %p777_p7 = pnand %p776_p6, %p770_p3 }
  0x10   :  { %780 = shalt.err (!%p777_p7)
}
  0x11   :  { %s832_s19 = smov 128   ;;  %s833_s20 = smov 8  }
  0x12   :  { %21 = dma.hbm_to_vmem [thread:$0]  %s1267_s0, 512, %s16_s10, [#allocation3], %s832_s19, %s832_s19, %s833_s20  }
  0x13   :  { %s834_s23 = smov [#allocation5]   ;;  %s781_s27 = scalar_lea.hbm %s1268_s1, 256 }
  0x14   :  { %s28_s24 = sshll.u32 %s834_s23, 4  ;;  %p782_p8 = scmp.ne.s32.totalorder %s1268_s1, %s781_s27  ;;  %s29_s24 = int_to_ptr.vmem [resolvable:$true] %s28_s24 }
  0x15   :  { %p785_p9 = scmp.lt.u32.totalorder %s781_s27, %s1268_s1 }
  0x17   :  { %p787_p10 = pnand %p785_p9, %p782_p8 }
  0x19   :  { %790 = shalt.err (!%p787_p10)
}
  0x1a   :  { %s791_s4 = scalar_lea.vmem %s29_s24, 256  ;;  %p796_p12 = scmp.lt.s32.totalorder %s29_s24, %s29_s24 }
  0x1b   :  { %p792_p11 = scmp.ne.s32.totalorder %s29_s24, %s791_s4  ;;  %p797_p13 = scmp.lt.s32.totalorder %s791_s4, %s791_s4 }
  0x1d   :  { %p798_p0 = por %p797_p13, %p796_p12 }
  0x1f   :  { %p799_p1 = pnand %p798_p0, %p792_p11 }
  0x21   :  { %802 = shalt.err (!%p799_p1)
}
  0x22   :  { %31 = dma.hbm_to_vmem [thread:$0]  %s1268_s1, 256, %s29_s24, [#allocation6]  }
  0x23   :  { %825 = dma.done.wait [#allocation3], 512  }
  0x24   :  { %826 = vsyncadd [#allocation3], 4294966784 }
  0x25   :  { %827 = dma.done.wait [#allocation6], 256  }
  0x26   :  { %828 = vsyncadd [#allocation6], 4294967040  ;;  %v884_v0 = vld [vmem:[#allocation5] sm:$0xff]  ;;  %s835_s6 = smov 127   ;;  %s836_s7 = smov 1   ;;  %v890_v1 = vld [vmem:[#allocation5 + $0x8] sm:$0xff]  ;;  %v38_v2 = vlaneseq }
  0x27   :  { %92 = vrot.lane.b32.xlu1 %v884_v0, %s835_s6  ;;  %83 = vrot.lane.b32.xlu0 %v884_v0, %s836_s7  ;;  %s837_s1 = smov 2   ;;  %s838_s8 = smov 126   ;;  %v841_v39 = vmov 0.0  }
  0x28   :  { %v904_v3 = vand.u32 127, %v38_v2  ;;  %s839_s9 = smov 112   ;;  %s840_s10 = smov 96   ;;  %240 = vmatprep.mubr.f32.mxu0 %v841_v39  ;;  %398 = vmatprep.mubr.f32.mxu1 %v841_v39 }
  0x29   :  { %s842_s11 = smov 16   ;;  %s843_s12 = smov 32  }
  0x2a   :  { %v907_v6 = vadd.s32 128, %v904_v3  ;;  %v910_v7 = vand.u32 15, %v904_v3  ;;  %vm1279_vm0 = vcmp.lt.s32.totalorder %v904_v3, 127  ;;  %vm87_vm1 = vcmp.lt.s32.totalorder %v904_v3, 1  ;;  %s844_s13 = smov [#allocation7]  }
  0x2b   :  { %94 = vrot.lane.b32.xlu1 %v890_v1, %s835_s6  ;;  %85 = vrot.lane.b32.xlu0 %v890_v1, %s836_s7  ;;  %vm1275_vm2 = vcmp.lt.s32.totalorder %v904_v3, 2  ;;  %vm116_vm9 = vcmp.lt.s32.totalorder %v904_v3, 126  ;;  %vm131_vm12 = vcmp.lt.s32.totalorder %v904_v3, 16  ;;  %vm140_vm13 = vcmp.lt.s32.totalorder %v904_v3, 112  ;;  %s731_s14 = sshll.u32 %s844_s13, 4  ;;  %s732_s14 = int_to_ptr.vmem [resolvable:$true] %s731_s14 }
  0x2c   :  { %v913_v8 = vand.u32 15, %v907_v6  ;;  %vm1276_vm3 = vcmp.le.s32.totalorder %v910_v7, 14  ;;  %vm1278_vm5 = vcmp.ge.s32.totalorder %v910_v7, 1  ;;  %vm1273_vm7 = vcmp.ge.s32.totalorder %v910_v7, 2  ;;  %s803_s15 = scalar_lea.vmem %s732_s14, 256  ;;  %p808_p3 = scmp.lt.s32.totalorder %s732_s14, %s732_s14 }
  0x2d   :  { %vm1271_vm8 = vcmp.le.s32.totalorder %v910_v7, 13  ;;  %vm160_vm14 = vcmp.lt.s32.totalorder %v904_v3, 96  ;;  %vm78_vm15 = vcmp.lt.s32.totalorder %v907_v6, 240  ;;  %p804_p2 = scmp.ne.s32.totalorder %s732_s14, %s803_s15  ;;  %p809_p4 = scmp.lt.s32.totalorder %s803_s15, %s803_s15 }
  0x2e   :  { %vm1277_vm4 = vcmp.le.s32.totalorder %v913_v8, 14  ;;  %vm66_vm6 = vcmp.ge.s32.totalorder %v913_v8, 1  ;;  %vm1272_vm10 = vcmp.ge.s32.totalorder %v913_v8, 2  ;;  %vm1270_vm11 = vcmp.le.s32.totalorder %v913_v8, 13 }
  0x2f   :  { %105 = vrot.lane.b32.xlu1 %v890_v1, %s837_s1  ;;  %103 = vrot.lane.b32.xlu0 %v884_v0, %s837_s1  ;;  %p810_p5 = por %p809_p4, %p808_p3 }
  0x31   :  { %p811_p6 = pnand %p810_p5, %p804_p2 }
  0x33   :  { %114 = vrot.lane.b32.xlu1 %v890_v1, %s838_s8  ;;  %112 = vrot.lane.b32.xlu0 %v884_v0, %s838_s8 }
  0x99   :  { %v93_v4 = vpop.permute.xlu1 %92  ;;  %v84_v5 = vpop.permute.xlu0 %83 }
  0x9d   :  { %v95_v9 = vpop.permute.xlu1 %94  ;;  %v86_v10 = vpop.permute.xlu0 %85 }
  0x9e   :  { %v97_v13 = vsel %vm1279_vm0, %v93_v4, %v95_v9  ;;  %v98_v14 = vsel %vm1279_vm0, %v95_v9, %v93_v4  ;;  %v88_v15 = vsel %vm87_vm1, %v84_v5, %v86_v10  ;;  %v89_v16 = vsel %vm87_vm1, %v86_v10, %v84_v5  ;;  %v171_v10 = vld [vmem:[#allocation2] sm:$0xff] }
  0x9f   :  { %v99_v19 = vsel %vm1276_vm3, %v97_v13, -inf  ;;  %v100_v20 = vsel %vm1277_vm4, %v98_v14, -inf  ;;  %v90_v21 = vsel %vm1278_vm5, %v89_v16, -inf  ;;  %v91_v22 = vsel %vm66_vm6, %v88_v15, -inf }
  0xa0   :  { %v101_v31 = vmax.f32 %v90_v21, %v99_v19  ;;  %v102_v32 = vmax.f32 %v91_v22, %v100_v20 }
  0xa1   :  { %v106_v11 = vpop.permute.xlu1 %105  ;;  %v104_v12 = vpop.permute.xlu0 %103 }
  0xa2   :  { %v108_v17 = vsel %vm1275_vm2, %v104_v12, %v106_v11  ;;  %v109_v18 = vsel %vm1275_vm2, %v106_v11, %v104_v12 }
  0xa3   :  { %v110_v27 = vsel %vm1273_vm7, %v109_v18, -inf  ;;  %v111_v28 = vsel %vm1272_vm10, %v108_v17, -inf  ;;  %vm151_vm10 = vcmp.lt.s32.totalorder %v904_v3, 32  ;;  %vm75_vm7 = vcmp.ge.s32.totalorder %v904_v3, 32 }
  0xa5   :  { %v115_v23 = vpop.permute.xlu1 %114  ;;  %v113_v24 = vpop.permute.xlu0 %112 }
  0xa6   :  { %v117_v25 = vsel %vm116_vm9, %v113_v24, %v115_v23  ;;  %v118_v26 = vsel %vm116_vm9, %v115_v23, %v113_v24 }
  0xa7   :  { %v119_v29 = vsel %vm1271_vm8, %v117_v25, -inf  ;;  %v120_v30 = vsel %vm1270_vm11, %v118_v26, -inf  ;;  %vm73_vm11 = vcmp.ge.s32.totalorder %v904_v3, 16  ;;  %vm1274_vm8 = vcmp.lt.s32.totalorder %v907_v6, 224 }
  0xa8   :  { %v121_v33 = vmax.f32 %v110_v27, %v119_v29  ;;  %v122_v34 = vmax.f32 %v111_v28, %v120_v30 }
  0xaa   :  { %v123_v35 = vmax.f32 %v101_v31, %v121_v33  ;;  %v124_v36 = vmax.f32 %v102_v32, %v122_v34 }
  0xac   :  { %v125_v37 = vmax.f32 %v123_v35, %v884_v0  ;;  %v126_v38 = vmax.f32 %v124_v36, %v890_v1 }
  0xae   :  { %138 = vrot.lane.b32.xlu1 %v126_v38, %s839_s9  ;;  %136 = vrot.lane.b32.xlu0 %v125_v37, %s839_s9 }
  0xb2   :  { %158 = vrot.lane.b32.xlu1 %v126_v38, %s840_s10  ;;  %156 = vrot.lane.b32.xlu0 %v125_v37, %s840_s10 }
  0xb6   :  { %129 = vrot.lane.b32.xlu1 %v126_v38, %s842_s11  ;;  %127 = vrot.lane.b32.xlu0 %v125_v37, %s842_s11 }
  0xba   :  { %149 = vrot.lane.b32.xlu1 %v126_v38, %s843_s12  ;;  %147 = vrot.lane.b32.xlu0 %v125_v37, %s843_s12 }
 0x120   :  { %v139_v40 = vpop.permute.xlu1 %138  ;;  %v137_v41 = vpop.permute.xlu0 %136 }
 0x121   :  { %v142_v47 = vsel %vm140_vm13, %v139_v40, %v137_v41  ;;  %v141_v50 = vsel %vm140_vm13, %v137_v41, %v139_v40 }
 0x122   :  { %v144_v54 = vsel %vm78_vm15, %v142_v47, -inf }
 0x124   :  { %v159_v42 = vpop.permute.xlu1 %158  ;;  %v157_v43 = vpop.permute.xlu0 %156 }
 0x125   :  { %v162_v48 = vsel %vm160_vm14, %v159_v42, %v157_v43  ;;  %v161_v58 = vsel %vm160_vm14, %v157_v43, %v159_v42 }
 0x126   :  { %v164_v55 = vsel %vm1274_vm8, %v162_v48, -inf  ;;  %vm172_vm8 = vcmask 64512  }
 0x128   :  { %v130_v44 = vpop.permute.xlu1 %129  ;;  %v128_v45 = vpop.permute.xlu0 %127 }
 0x129   :  { %v133_v46 = vsel %vm131_vm12, %v130_v44, %v128_v45  ;;  %v132_v49 = vsel %vm131_vm12, %v128_v45, %v130_v44 }
 0x12a   :  { %v134_v51 = vsel %vm73_vm11, %v133_v46, -inf  ;;  %v146_v59 = vmax.f32 %v132_v49, %v144_v54 }
 0x12b   :  { %v145_v62 = vmax.f32 %v134_v51, %v141_v50 }
 0x12c   :  { %v150_v52 = vpop.permute.xlu1 %149  ;;  %v148_v53 = vpop.permute.xlu0 %147 }
 0x12d   :  { %v152_v56 = vsel %vm151_vm10, %v148_v53, %v150_v52  ;;  %v153_v57 = vsel %vm151_vm10, %v150_v52, %v148_v53 }
 0x12e   :  { %v154_v60 = vsel %vm75_vm7, %v153_v57, -inf  ;;  %v166_v61 = vmax.f32 %v152_v56, %v164_v55 }
 0x12f   :  { %v165_v63 = vmax.f32 %v154_v60, %v161_v58 }
 0x130   :  { %v168_v2 = vmax.f32 %v146_v59, %v166_v61 }
 0x131   :  { %v167_v4 = vmax.f32 %v145_v62, %v165_v63 }
 0x132   :  { %v170_v5 = vmax.f32 %v168_v2, %v126_v38 }
 0x133   :  { %v169_v9 = vmax.f32 %v167_v4, %v125_v37 }
 0x134   :  { %176 = vmatprep.subr.mxu0 %v170_v5 }
 0x135   :  { %177 = vmatpush1.msra.mxu0 %v169_v9 }
 0x136   :  { %741 = vmatmul.mubr.msk.f32.vlgmr.msra.gmra.mrb[0].mxu0 %vm172_vm8, %v171_v10 }
 0x137   :  { %556 = vmatprep.mubr.f32.mxu0 %v841_v39 }
 0x209   :  { %v1005_v11 = vpop.f32.mrb[0].mxu0 }
 0x20a   :  { %249 = vrot.lane.b32.xlu0 %v1005_v11, %s836_s7  ;;  %v1009_v12 = vpop.f32.mrb[1].mxu0 }
 0x20b   :  { %251 = vrot.lane.b32.xlu1 %v1009_v12, %s836_s7 }
 0x20e   :  { %257 = vrot.lane.b32.xlu0 %v1005_v11, %s835_s6 }
 0x20f   :  { %259 = vrot.lane.b32.xlu1 %v1009_v12, %s835_s6 }
 0x212   :  { %267 = vrot.lane.b32.xlu0 %v1005_v11, %s837_s1 }
 0x213   :  { %269 = vrot.lane.b32.xlu1 %v1009_v12, %s837_s1 }
 0x216   :  { %275 = vrot.lane.b32.xlu0 %v1005_v11, %s838_s8 }
 0x217   :  { %277 = vrot.lane.b32.xlu1 %v1009_v12, %s838_s8 }
 0x27c   :  { %v250_v13 = vpop.permute.xlu0 %249 }
 0x27d   :  { %v252_v14 = vpop.permute.xlu1 %251 }
 0x27e   :  { %v253_v21 = vsel %vm87_vm1, %v250_v13, %v252_v14  ;;  %v254_v22 = vsel %vm87_vm1, %v252_v14, %v250_v13 }
 0x27f   :  { %v255_v29 = vsel %vm1278_vm5, %v254_v22, -inf  ;;  %v256_v30 = vsel %vm66_vm6, %v253_v21, -inf  ;;  %vm1283_vm5 = vcmp.le.s32.totalorder %v913_v8, 13  ;;  %v248_v21 = vadd.f32 %v1009_v12, %v890_v1 }
 0x280   :  { %v258_v15 = vpop.permute.xlu0 %257 }
 0x281   :  { %v260_v16 = vpop.permute.xlu1 %259 }
 0x282   :  { %v261_v19 = vsel %vm1279_vm0, %v258_v15, %v260_v16  ;;  %v262_v20 = vsel %vm1279_vm0, %v260_v16, %v258_v15 }
 0x283   :  { %v263_v26 = vsel %vm1276_vm3, %v261_v19, -inf  ;;  %v264_v27 = vsel %vm1277_vm4, %v262_v20, -inf  ;;  %vm1281_vm3 = vcmp.ge.s32.totalorder %v913_v8, 2  ;;  %vm1282_vm4 = vcmp.le.s32.totalorder %v910_v7, 13 }
 0x284   :  { %v268_v17 = vpop.permute.xlu0 %267  ;;  %v265_v37 = vmax.f32 %v255_v29, %v263_v26  ;;  %v266_v38 = vmax.f32 %v256_v30, %v264_v27  ;;  %v247_v19 = vadd.f32 %v1005_v11, %v884_v0 }
 0x285   :  { %v270_v18 = vpop.permute.xlu1 %269 }
 0x286   :  { %v271_v23 = vsel %vm1275_vm2, %v268_v17, %v270_v18  ;;  %v272_v24 = vsel %vm1275_vm2, %v270_v18, %v268_v17  ;;  %vm1280_vm2 = vcmp.ge.s32.totalorder %v910_v7, 2  ;;  %v330_v18 = vld [vmem:[#allocation2 + $0x8] sm:$0xff] }
 0x287   :  { %v273_v33 = vsel %vm1280_vm2, %v272_v24, -inf  ;;  %v274_v34 = vsel %vm1281_vm3, %v271_v23, -inf  ;;  %vm1284_vm2 = vcmp.lt.s32.totalorder %v907_v6, 224  ;;  %vm1285_vm3 = vcmp.lt.s32.totalorder %v904_v3, 2 }
 0x288   :  { %v276_v25 = vpop.permute.xlu0 %275 }
 0x289   :  { %v278_v28 = vpop.permute.xlu1 %277 }
 0x28a   :  { %v279_v31 = vsel %vm116_vm9, %v276_v25, %v278_v28  ;;  %v280_v32 = vsel %vm116_vm9, %v278_v28, %v276_v25 }
 0x28b   :  { %v281_v35 = vsel %vm1282_vm4, %v279_v31, -inf  ;;  %v282_v36 = vsel %vm1283_vm5, %v280_v32, -inf  ;;  %vm1286_vm4 = vmmov %vm1285_vm3  ;;  %vm1287_vm5 = vcmp.le.s32.totalorder %v910_v7, 14 }
 0x28c   :  { %v283_v40 = vmax.f32 %v273_v33, %v281_v35  ;;  %v284_v41 = vmax.f32 %v274_v34, %v282_v36 }
 0x28e   :  { %v285_v42 = vmax.f32 %v265_v37, %v283_v40  ;;  %v286_v43 = vmax.f32 %v266_v38, %v284_v41 }
 0x290   :  { %v287_v44 = vmax.f32 %v285_v42, %v1005_v11  ;;  %v288_v45 = vmax.f32 %v286_v43, %v1009_v12 }
 0x292   :  { %299 = vrot.lane.b32.xlu1 %v288_v45, %s839_s9  ;;  %297 = vrot.lane.b32.xlu0 %v287_v44, %s839_s9 }
 0x296   :  { %317 = vrot.lane.b32.xlu1 %v288_v45, %s840_s10  ;;  %315 = vrot.lane.b32.xlu0 %v287_v44, %s840_s10 }
 0x29a   :  { %291 = vrot.lane.b32.xlu1 %v288_v45, %s842_s11  ;;  %289 = vrot.lane.b32.xlu0 %v287_v44, %s842_s11 }
 0x29e   :  { %309 = vrot.lane.b32.xlu1 %v288_v45, %s843_s12  ;;  %307 = vrot.lane.b32.xlu0 %v287_v44, %s843_s12 }
 0x304   :  { %v300_v46 = vpop.permute.xlu1 %299  ;;  %v298_v47 = vpop.permute.xlu0 %297 }
 0x305   :  { %v302_v53 = vsel %vm140_vm13, %v300_v46, %v298_v47  ;;  %v301_v56 = vsel %vm140_vm13, %v298_v47, %v300_v46 }
 0x306   :  { %v304_v60 = vsel %vm78_vm15, %v302_v53, -inf }
 0x308   :  { %v318_v48 = vpop.permute.xlu1 %317  ;;  %v316_v49 = vpop.permute.xlu0 %315 }
 0x309   :  { %v320_v54 = vsel %vm160_vm14, %v318_v48, %v316_v49  ;;  %v319_v2 = vsel %vm160_vm14, %v316_v49, %v318_v48 }
 0x30a   :  { %v322_v61 = vsel %vm1284_vm2, %v320_v54, -inf  ;;  %vm1288_vm2 = vcmp.le.s32.totalorder %v913_v8, 14 }
 0x30c   :  { %v292_v50 = vpop.permute.xlu1 %291  ;;  %v290_v51 = vpop.permute.xlu0 %289 }
 0x30d   :  { %v294_v52 = vsel %vm131_vm12, %v292_v50, %v290_v51  ;;  %v293_v55 = vsel %vm131_vm12, %v290_v51, %v292_v50 }
 0x30e   :  { %v295_v57 = vsel %vm73_vm11, %v294_v52, -inf  ;;  %v306_v4 = vmax.f32 %v293_v55, %v304_v60 }
 0x30f   :  { %v305_v10 = vmax.f32 %v295_v57, %v301_v56 }
 0x310   :  { %v310_v58 = vpop.permute.xlu1 %309  ;;  %v308_v59 = vpop.permute.xlu0 %307 }
 0x311   :  { %v311_v62 = vsel %vm151_vm10, %v308_v59, %v310_v58  ;;  %v312_v63 = vsel %vm151_vm10, %v310_v58, %v308_v59 }
 0x312   :  { %v313_v5 = vsel %vm75_vm7, %v312_v63, -inf  ;;  %v324_v9 = vmax.f32 %v311_v62, %v322_v61 }
 0x313   :  { %v323_v13 = vmax.f32 %v313_v5, %v319_v2 }
 0x314   :  { %v326_v14 = vmax.f32 %v306_v4, %v324_v9 }
 0x315   :  { %v325_v15 = vmax.f32 %v305_v10, %v323_v13 }
 0x316   :  { %v328_v16 = vmax.f32 %v326_v14, %v288_v45 }
 0x317   :  { %v327_v17 = vmax.f32 %v325_v15, %v287_v44 }
 0x318   :  { %334 = vmatprep.subr.mxu1 %v328_v16 }
 0x319   :  { %335 = vmatpush1.msra.mxu1 %v327_v17 }
 0x31a   :  { %742 = vmatmul.mubr.msk.f32.vlgmr.msra.gmra.mrb[0].mxu1 %vm172_vm8, %v330_v18 }
 0x31b   :  { %714 = vmatprep.mubr.f32.mxu1 %v841_v39 }
 0x3ed   :  { %v400_v20 = vpop.f32.mrb[0].mxu1 }
 0x3ee   :  { %407 = vrot.lane.b32.xlu0 %v400_v20, %s836_s7  ;;  %v402_v22 = vpop.f32.mrb[1].mxu1  ;;  %v1098_v23 = vadd.f32 %v400_v20, %v247_v19 }
 0x3ef   :  { %409 = vrot.lane.b32.xlu1 %v402_v22, %s836_s7  ;;  %v1101_v24 = vadd.f32 %v402_v22, %v248_v21 }
 0x3f2   :  { %415 = vrot.lane.b32.xlu0 %v400_v20, %s835_s6 }
 0x3f3   :  { %417 = vrot.lane.b32.xlu1 %v402_v22, %s835_s6 }
 0x3f6   :  { %425 = vrot.lane.b32.xlu0 %v400_v20, %s837_s1 }
 0x3f7   :  { %427 = vrot.lane.b32.xlu1 %v402_v22, %s837_s1 }
 0x3fa   :  { %433 = vrot.lane.b32.xlu0 %v400_v20, %s838_s8 }
 0x3fb   :  { %435 = vrot.lane.b32.xlu1 %v402_v22, %s838_s8 }
 0x460   :  { %v408_v0 = vpop.permute.xlu0 %407 }
 0x461   :  { %v410_v1 = vpop.permute.xlu1 %409 }
 0x462   :  { %v411_v28 = vsel %vm87_vm1, %v408_v0, %v410_v1  ;;  %v412_v29 = vsel %vm87_vm1, %v410_v1, %v408_v0 }
 0x463   :  { %v414_v37 = vsel %vm66_vm6, %v411_v28, -inf }
 0x464   :  { %v416_v39 = vpop.permute.xlu0 %415 }
 0x465   :  { %v418_v11 = vpop.permute.xlu1 %417 }
 0x466   :  { %v419_v26 = vsel %vm1279_vm0, %v416_v39, %v418_v11  ;;  %v420_v27 = vsel %vm1279_vm0, %v418_v11, %v416_v39  ;;  %vm1289_vm0 = vcmp.ge.s32.totalorder %v910_v7, 1  ;;  %v488_v39 = vld [vmem:[#allocation2 + $0x10] sm:$0xff] }
 0x467   :  { %v421_v33 = vsel %vm1287_vm5, %v419_v26, -inf  ;;  %v422_v34 = vsel %vm1288_vm2, %v420_v27, -inf  ;;  %v413_v36 = vsel %vm1289_vm0, %v412_v29, -inf  ;;  %vm1292_vm5 = vcmp.le.s32.totalorder %v910_v7, 13 }
 0x468   :  { %v426_v12 = vpop.permute.xlu0 %425  ;;  %vm1293_vm0 = vcmp.le.s32.totalorder %v913_v8, 13  ;;  %v423_v45 = vmax.f32 %v413_v36, %v421_v33  ;;  %v424_v46 = vmax.f32 %v414_v37, %v422_v34  ;;  %vm1294_vm2 = vcmp.lt.s32.totalorder %v907_v6, 224 }
 0x469   :  { %v428_v25 = vpop.permute.xlu1 %427 }
 0x46a   :  { %v429_v30 = vsel %vm1285_vm3, %v426_v12, %v428_v25  ;;  %v430_v31 = vsel %vm1286_vm4, %v428_v25, %v426_v12  ;;  %vm1290_vm3 = vcmp.ge.s32.totalorder %v910_v7, 2  ;;  %vm1291_vm4 = vcmp.ge.s32.totalorder %v913_v8, 2 }
 0x46b   :  { %v431_v41 = vsel %vm1290_vm3, %v430_v31, -inf  ;;  %v432_v42 = vsel %vm1291_vm4, %v429_v30, -inf  ;;  %vm1295_vm3 = vcmp.lt.s32.totalorder %v904_v3, 127 }
 0x46c   :  { %v434_v32 = vpop.permute.xlu0 %433  ;;  %vm1296_vm4 = vmmov %vm1295_vm3 }
 0x46d   :  { %v436_v35 = vpop.permute.xlu1 %435 }
 0x46e   :  { %v437_v38 = vsel %vm116_vm9, %v434_v32, %v436_v35  ;;  %v438_v40 = vsel %vm116_vm9, %v436_v35, %v434_v32 }
 0x46f   :  { %v439_v43 = vsel %vm1292_vm5, %v437_v38, -inf  ;;  %v440_v44 = vsel %vm1293_vm0, %v438_v40, -inf  ;;  %vm1297_vm5 = vcmp.lt.s32.totalorder %v904_v3, 2 }
 0x470   :  { %v441_v47 = vmax.f32 %v431_v41, %v439_v43  ;;  %v442_v48 = vmax.f32 %v432_v42, %v440_v44  ;;  %vm1298_vm0 = vmmov %vm1297_vm5 }
 0x472   :  { %v443_v49 = vmax.f32 %v423_v45, %v441_v47  ;;  %v444_v50 = vmax.f32 %v424_v46, %v442_v48 }
 0x474   :  { %v445_v51 = vmax.f32 %v443_v49, %v400_v20  ;;  %v446_v52 = vmax.f32 %v444_v50, %v402_v22 }
 0x476   :  { %457 = vrot.lane.b32.xlu1 %v446_v52, %s839_s9  ;;  %455 = vrot.lane.b32.xlu0 %v445_v51, %s839_s9 }
 0x47a   :  { %475 = vrot.lane.b32.xlu1 %v446_v52, %s840_s10  ;;  %473 = vrot.lane.b32.xlu0 %v445_v51, %s840_s10 }
 0x47e   :  { %449 = vrot.lane.b32.xlu1 %v446_v52, %s842_s11  ;;  %447 = vrot.lane.b32.xlu0 %v445_v51, %s842_s11 }
 0x482   :  { %467 = vrot.lane.b32.xlu1 %v446_v52, %s843_s12  ;;  %465 = vrot.lane.b32.xlu0 %v445_v51, %s843_s12 }
 0x4e8   :  { %v458_v53 = vpop.permute.xlu1 %457  ;;  %v456_v54 = vpop.permute.xlu0 %455 }
 0x4e9   :  { %v460_v60 = vsel %vm140_vm13, %v458_v53, %v456_v54  ;;  %v459_v63 = vsel %vm140_vm13, %v456_v54, %v458_v53 }
 0x4ea   :  { %v462_v9 = vsel %vm78_vm15, %v460_v60, -inf }
 0x4ec   :  { %v476_v55 = vpop.permute.xlu1 %475  ;;  %v474_v56 = vpop.permute.xlu0 %473 }
 0x4ed   :  { %v478_v61 = vsel %vm160_vm14, %v476_v55, %v474_v56  ;;  %v477_v15 = vsel %vm160_vm14, %v474_v56, %v476_v55 }
 0x4ee   :  { %v480_v10 = vsel %vm1294_vm2, %v478_v61, -inf  ;;  %vm1299_vm2 = vcmp.le.s32.totalorder %v910_v7, 14 }
 0x4f0   :  { %v450_v57 = vpop.permute.xlu1 %449  ;;  %v448_v58 = vpop.permute.xlu0 %447 }
 0x4f1   :  { %v452_v59 = vsel %vm131_vm12, %v450_v57, %v448_v58  ;;  %v451_v62 = vsel %vm131_vm12, %v448_v58, %v450_v57 }
 0x4f2   :  { %v453_v2 = vsel %vm73_vm11, %v452_v59, -inf  ;;  %v464_v16 = vmax.f32 %v451_v62, %v462_v9 }
 0x4f3   :  { %v463_v19 = vmax.f32 %v453_v2, %v459_v63 }
 0x4f4   :  { %v468_v4 = vpop.permute.xlu1 %467  ;;  %v466_v5 = vpop.permute.xlu0 %465 }
 0x4f5   :  { %v469_v13 = vsel %vm151_vm10, %v466_v5, %v468_v4  ;;  %v470_v14 = vsel %vm151_vm10, %v468_v4, %v466_v5 }
 0x4f6   :  { %v471_v17 = vsel %vm75_vm7, %v470_v14, -inf  ;;  %v482_v18 = vmax.f32 %v469_v13, %v480_v10 }
 0x4f7   :  { %v481_v20 = vmax.f32 %v471_v17, %v477_v15 }
 0x4f8   :  { %v484_v21 = vmax.f32 %v464_v16, %v482_v18 }
 0x4f9   :  { %v483_v22 = vmax.f32 %v463_v19, %v481_v20 }
 0x4fa   :  { %v486_v0 = vmax.f32 %v484_v21, %v446_v52 }
 0x4fb   :  { %v485_v1 = vmax.f32 %v483_v22, %v445_v51 }
 0x4fc   :  { %492 = vmatprep.subr.mxu0 %v486_v0 }
 0x4fd   :  { %493 = vmatpush1.msra.mxu0 %v485_v1 }
 0x4fe   :  { %743 = vmatmul.mubr.msk.f32.vlgmr.msra.gmra.mrb[2].mxu0 %vm172_vm8, %v488_v39 }
 0x5d1   :  { %v558_v11 = vpop.f32.mrb[2].mxu0 }
 0x5d2   :  { %565 = vrot.lane.b32.xlu0 %v558_v11, %s836_s7  ;;  %v560_v12 = vpop.f32.mrb[3].mxu0  ;;  %v1176_v25 = vadd.f32 %v558_v11, %v1098_v23 }
 0x5d3   :  { %567 = vrot.lane.b32.xlu1 %v560_v12, %s836_s7  ;;  %v1180_v26 = vadd.f32 %v560_v12, %v1101_v24 }
 0x5d6   :  { %573 = vrot.lane.b32.xlu0 %v558_v11, %s835_s6 }
 0x5d7   :  { %575 = vrot.lane.b32.xlu1 %v560_v12, %s835_s6 }
 0x5da   :  { %583 = vrot.lane.b32.xlu0 %v558_v11, %s837_s1 }
 0x5db   :  { %585 = vrot.lane.b32.xlu1 %v560_v12, %s837_s1 }
 0x5de   :  { %591 = vrot.lane.b32.xlu0 %v558_v11, %s838_s8 }
 0x5df   :  { %593 = vrot.lane.b32.xlu1 %v560_v12, %s838_s8 }
 0x644   :  { %v566_v27 = vpop.permute.xlu0 %565 }
 0x645   :  { %v568_v23 = vpop.permute.xlu1 %567 }
 0x646   :  { %v569_v33 = vsel %vm87_vm1, %v566_v27, %v568_v23  ;;  %v570_v34 = vsel %vm87_vm1, %v568_v23, %v566_v27  ;;  %vm1302_vm1 = vcmp.ge.s32.totalorder %v910_v7, 2 }
 0x647   :  { %v572_v43 = vsel %vm66_vm6, %v569_v33, -inf  ;;  %vm1306_vm6 = vcmp.lt.s32.totalorder %v907_v6, 224 }
 0x648   :  { %v574_v28 = vpop.permute.xlu0 %573 }
 0x649   :  { %v576_v29 = vpop.permute.xlu1 %575 }
 0x64a   :  { %v577_v24 = vsel %vm1295_vm3, %v574_v28, %v576_v29  ;;  %v578_v32 = vsel %vm1296_vm4, %v576_v29, %v574_v28  ;;  %vm1300_vm3 = vcmp.le.s32.totalorder %v913_v8, 14  ;;  %vm1301_vm4 = vcmp.ge.s32.totalorder %v910_v7, 1 }
 0x64b   :  { %v579_v38 = vsel %vm1299_vm2, %v577_v24, -inf  ;;  %v580_v40 = vsel %vm1300_vm3, %v578_v32, -inf  ;;  %v571_v42 = vsel %vm1301_vm4, %v570_v34, -inf  ;;  %vm1305_vm2 = vcmp.le.s32.totalorder %v913_v8, 13 }
 0x64c   :  { %v584_v30 = vpop.permute.xlu0 %583  ;;  %v581_v50 = vmax.f32 %v571_v42, %v579_v38  ;;  %v582_v51 = vmax.f32 %v572_v43, %v580_v40 }
 0x64d   :  { %v586_v31 = vpop.permute.xlu1 %585 }
 0x64e   :  { %v587_v35 = vsel %vm1297_vm5, %v584_v30, %v586_v31  ;;  %v588_v36 = vsel %vm1298_vm0, %v586_v31, %v584_v30  ;;  %vm1303_vm5 = vcmp.ge.s32.totalorder %v913_v8, 2  ;;  %vm1304_vm0 = vcmp.le.s32.totalorder %v910_v7, 13 }
 0x64f   :  { %v589_v46 = vsel %vm1302_vm1, %v588_v36, -inf  ;;  %v590_v47 = vsel %vm1303_vm5, %v587_v35, -inf }
 0x650   :  { %v592_v37 = vpop.permute.xlu0 %591 }
 0x651   :  { %v594_v41 = vpop.permute.xlu1 %593 }
 0x652   :  { %v595_v44 = vsel %vm116_vm9, %v592_v37, %v594_v41  ;;  %v596_v45 = vsel %vm116_vm9, %v594_v41, %v592_v37 }
 0x653   :  { %v597_v48 = vsel %vm1304_vm0, %v595_v44, -inf  ;;  %v598_v49 = vsel %vm1305_vm2, %v596_v45, -inf }
 0x654   :  { %v599_v52 = vmax.f32 %v589_v46, %v597_v48  ;;  %v600_v53 = vmax.f32 %v590_v47, %v598_v49 }
 0x656   :  { %v601_v54 = vmax.f32 %v581_v50, %v599_v52  ;;  %v602_v55 = vmax.f32 %v582_v51, %v600_v53 }
 0x658   :  { %v603_v56 = vmax.f32 %v601_v54, %v558_v11  ;;  %v604_v57 = vmax.f32 %v602_v55, %v560_v12  ;;  %v646_v12 = vld [vmem:[#allocation2 + $0x18] sm:$0xff] }
 0x65a   :  { %615 = vrot.lane.b32.xlu1 %v604_v57, %s839_s9  ;;  %613 = vrot.lane.b32.xlu0 %v603_v56, %s839_s9 }
 0x65e   :  { %633 = vrot.lane.b32.xlu1 %v604_v57, %s840_s10  ;;  %631 = vrot.lane.b32.xlu0 %v603_v56, %s840_s10 }
 0x662   :  { %607 = vrot.lane.b32.xlu1 %v604_v57, %s842_s11  ;;  %605 = vrot.lane.b32.xlu0 %v603_v56, %s842_s11 }
 0x666   :  { %625 = vrot.lane.b32.xlu1 %v604_v57, %s843_s12  ;;  %623 = vrot.lane.b32.xlu0 %v603_v56, %s843_s12 }
 0x6cc   :  { %v616_v7 = vpop.permute.xlu1 %615  ;;  %v614_v8 = vpop.permute.xlu0 %613 }
 0x6cd   :  { %v618_v63 = vsel %vm140_vm13, %v616_v7, %v614_v8  ;;  %v617_v5 = vsel %vm140_vm13, %v614_v8, %v616_v7 }
 0x6ce   :  { %v620_v14 = vsel %vm78_vm15, %v618_v63, -inf }
 0x6d0   :  { %v634_v58 = vpop.permute.xlu1 %633  ;;  %v632_v59 = vpop.permute.xlu0 %631 }
 0x6d1   :  { %v636_v2 = vsel %vm160_vm14, %v634_v58, %v632_v59  ;;  %v635_v18 = vsel %vm160_vm14, %v632_v59, %v634_v58 }
 0x6d2   :  { %v638_v15 = vsel %vm1306_vm6, %v636_v2, -inf }
 0x6d4   :  { %v608_v60 = vpop.permute.xlu1 %607  ;;  %v606_v61 = vpop.permute.xlu0 %605 }
 0x6d5   :  { %v610_v62 = vsel %vm131_vm12, %v608_v60, %v606_v61  ;;  %v609_v4 = vsel %vm131_vm12, %v606_v61, %v608_v60 }
 0x6d6   :  { %v611_v9 = vsel %vm73_vm11, %v610_v62, -inf  ;;  %v622_v19 = vmax.f32 %v609_v4, %v620_v14 }
 0x6d7   :  { %v621_v22 = vmax.f32 %v611_v9, %v617_v5 }
 0x6d8   :  { %v626_v10 = vpop.permute.xlu1 %625  ;;  %v624_v13 = vpop.permute.xlu0 %623 }
 0x6d9   :  { %v627_v16 = vsel %vm151_vm10, %v624_v13, %v626_v10  ;;  %v628_v17 = vsel %vm151_vm10, %v626_v10, %v624_v13 }
 0x6da   :  { %v629_v20 = vsel %vm75_vm7, %v628_v17, -inf  ;;  %v640_v21 = vmax.f32 %v627_v16, %v638_v15 }
 0x6db   :  { %v639_v0 = vmax.f32 %v629_v20, %v635_v18 }
 0x6dc   :  { %v642_v1 = vmax.f32 %v622_v19, %v640_v21 }
 0x6dd   :  { %v641_v39 = vmax.f32 %v621_v22, %v639_v0 }
 0x6de   :  { %v644_v6 = vmax.f32 %v642_v1, %v604_v57 }
 0x6df   :  { %v643_v11 = vmax.f32 %v641_v39, %v603_v56 }
 0x6e0   :  { %650 = vmatprep.subr.mxu1 %v644_v6 }
 0x6e1   :  { %651 = vmatpush1.msra.mxu1 %v643_v11 }
 0x6e2   :  { %744 = vmatmul.mubr.msk.f32.vlgmr.msra.gmra.mrb[2].mxu1 %vm172_vm8, %v646_v12 }
 0x7b5   :  { %v716_v27 = vpop.f32.mrb[2].mxu1 }
 0x7b6   :  { %v721_v23 = vadd.f32 %v716_v27, %v1176_v25  ;;  %v718_v28 = vpop.f32.mrb[3].mxu1 }
 0x7b7   :  { %v722_v3 = vadd.f32 %v718_v28, %v1180_v26 }
 0x7b8   :  { %723 = vst [vmem:[#allocation7] sm:$0xff] %v721_v23 }
 0x7b9   :  { %724 = vst [vmem:[#allocation7 + $0x8] sm:$0xff] %v722_v3 }
 0x7ba   :  { %814 = shalt.err (!%p811_p6)
}
 0x7bb   :  { %s815_s18 = scalar_lea.hbm %s1269_s2, 256 }
 0x7bc   :  { %p816_p7 = scmp.ne.s32.totalorder %s1269_s2, %s815_s18  ;;  %p819_p8 = scmp.lt.u32.totalorder %s815_s18, %s1269_s2 }
 0x7be   :  { %p821_p9 = pnand %p819_p8, %p816_p7 }
 0x7c0   :  { %824 = shalt.err (!%p821_p9)
}
 0x7c1   :  { %734 = dma.vmem_to_hbm [thread:$0]  %s732_s14, 256, %s1269_s2, [#allocation4]  }
 0x7c2   :  { %829 = dma.done.wait [#allocation4], 256  }
 0x7c3   :  { %830 = vsyncadd [#allocation4], 4294967040 }
 0x7c4   :  { %738 = vsyncpa [#allocation3], 1 }
 0x7c5   :  { %739 = vsyncpa [#allocation6], 1 }
 0x7c6   :  { %740 = vsyncpa [#allocation4], 1 }

</bundles_post_ra>
